<compile_context>
chip_gen: v7x
topology: tpu7x:2x2x1
jax: 0.10.0
libtpu: 0.0.40
codegen_flags: <defaults>
</compile_context>

<pallas_src>
import functools

import jax
import jax.numpy as jnp
from jax.experimental import pallas as pl
from jax.experimental.pallas import tpu as pltpu


# Does lax.bitcast_convert_type(uint32 -> 16 bit) put the low-order bits at
# index 0 of the new minor dim?  Probed once at import time so the in-kernel
# packing order always makes the wrapper-side bitcast a pure view.
_BITCAST_LSB_FIRST = bool(
    jax.lax.bitcast_convert_type(jnp.array([1], jnp.uint32), jnp.uint16)[0, 0] == 1
)


# ----------------------------- Pallas kernel -------------------------------

def _up_kernel(w_ref, b_ref, x_ref, o_ref, *, lsb_first):
    # w_ref: (4*Cout, C)     bf16, row index = (dy*2 + dx)*Cout + co
    # b_ref: (4*Cout, 1)     f32,  same row order
    # x_ref: (C, th*W)       f32,  th image rows of one image (lane-dense)
    # o_ref: (Cout, 2*th, W) uint32, final NCHW layout; each u32 packs the
    #        (dx=0, dx=1) bf16 pair of one output pixel column-pair.
    cout, two_th, w = o_ref.shape
    th = two_th // 2

    x = x_ref[...].astype(jnp.bfloat16)                  # cast in-kernel (VPU slack)
    acc = jnp.dot(w_ref[...], x, preferred_element_type=jnp.float32)
    acc = acc + b_ref[...]                               # (4*Cout, th*W) f32

    # f32 -> bf16 bits (round-to-nearest-even), kept in the low 16 bits of u32.
    bits = pltpu.bitcast(acc, jnp.uint32)
    rnd = jnp.uint32(0x7FFF) + ((bits >> 16) & jnp.uint32(1))
    b16 = (bits + rnd) >> 16                             # (4*Cout, th*W) u32

    g00 = b16[0 * cout:1 * cout, :]                      # dy=0, dx=0
    g01 = b16[1 * cout:2 * cout, :]                      # dy=0, dx=1
    g10 = b16[2 * cout:3 * cout, :]                      # dy=1, dx=0
    g11 = b16[3 * cout:4 * cout, :]                      # dy=1, dx=1

    # Lane (dx) interleave: pack the two bf16 neighbours into one uint32 so the
    # interleave becomes a free bitcast in the wrapper.
    if lsb_first:
        r_even = g00 | (g01 << 16)                       # output rows 2*i
        r_odd = g10 | (g11 << 16)                        # output rows 2*i + 1
    else:
        r_even = g01 | (g00 << 16)
        r_odd = g11 | (g10 << 16)

    # Sublane (dy) interleave: static, unrolled row stores into the NCHW block.
    for i in range(th):
        o_ref[:, 2 * i, :] = r_even[:, i * w:(i + 1) * w]
        o_ref[:, 2 * i + 1, :] = r_odd[:, i * w:(i + 1) * w]


# ----------------------------- wrapper --------------------------------------

def _pick_row_tile(h, w, target):
    """Largest th dividing H with th*W <= target such that the (C, th*W) input
    block and (Cout, 2*th, W) output block satisfy the (8, 128) block rules."""
    if h * w <= target:
        return h                      # whole image per grid step (full-dim blocks)
    for th in range(h, 0, -1):
        if h % th:
            continue
        if th * w > target:
            continue
        if (th * w) % 128 == 0 and th % 4 == 0:
            return th
    # Fall back to the whole image (always legal: blocks equal the full dims).
    return h


def conv_transpose_2x2(x, weight, bias, *, tile_hw=2048,
                       vmem_limit_bytes=48 * 1024 * 1024):
    """ConvTranspose2d(kernel=2, stride=2), NCHW in / NCHW out.

    x:      (N, C, H, W)      (read once from HBM, cast to bf16 in-kernel)
    weight: (C, Cout, 2, 2)   PyTorch ConvTranspose2d layout
    bias:   (Cout,)
    returns (N, Cout, 2H, 2W) bfloat16
    """
    n, c, h, w = x.shape
    cout = weight.shape[1]
    assert weight.shape == (c, cout, 2, 2)

    th = _pick_row_tile(h, w, tile_hw)
    n_tiles = h // th

    # (N, C, H*W): free reshape; the kernel reads lane-dense (C, th*W) tiles.
    x3 = x.reshape(n, c, h * w)
    # (4*Cout, C), row index = (dy*2 + dx)*Cout + co  (tiny weight shuffle).
    w4 = jnp.transpose(weight, (2, 3, 1, 0)).reshape(4 * cout, c).astype(jnp.bfloat16)
    b4 = jnp.tile(bias.astype(jnp.float32), 4).reshape(4 * cout, 1)

    kernel = functools.partial(_up_kernel, lsb_first=_BITCAST_LSB_FIRST)

    m_total = n * h * w
    cost = pl.CostEstimate(
        flops=2 * (4 * cout) * c * m_total,
        transcendentals=0,
        bytes_accessed=(x3.size * x3.dtype.itemsize
                        + w4.size * 2 + b4.size * 4
                        + n * cout * 2 * h * w * 4),
    )

    out_u32 = pl.pallas_call(
        kernel,
        out_shape=jax.ShapeDtypeStruct((n, cout, 2 * h, w), jnp.uint32),
        grid=(n, n_tiles),
        in_specs=[
            pl.BlockSpec((4 * cout, c), lambda i, t: (0, 0)),          # weights (resident)
            pl.BlockSpec((4 * cout, 1), lambda i, t: (0, 0)),          # bias (resident)
            pl.BlockSpec((None, c, th * w), lambda i, t: (i, 0, t)),   # X tile
        ],
        out_specs=pl.BlockSpec((None, cout, 2 * th, w), lambda i, t: (i, 0, t, 0)),
        compiler_params=pltpu.CompilerParams(
            dimension_semantics=("parallel", "parallel"),
            vmem_limit_bytes=vmem_limit_bytes,
        ),
        cost_estimate=cost,
    )(w4, b4, x3)

    # Free layout fix-ups: u32 -> bf16 bitcast adds a minor dim of size 2
    # (= the dx neighbours); the reshape merges contiguous minor dims.
    out = jax.lax.bitcast_convert_type(out_u32, jnp.bfloat16)   # (N, Cout, 2H, W, 2)
    return out.reshape(n, cout, 2 * h, 2 * w)


def up_forward(x, params):
    """Forward of `_up`: a single ConvTranspose2d(kernel=2, stride=2)."""
    weight, bias = params
    return conv_transpose_2x2(x, weight, bias)


def init_up_params(key, channel_in, dtype=jnp.float32):
    c_out = int(channel_in / 2.0)
    kw, kb = jax.random.split(key)
    w = 0.1 * jax.random.normal(kw, (channel_in, c_out, 2, 2), dtype=dtype)
    b = 0.1 * jax.random.normal(kb, (c_out,), dtype=dtype)
    return (w, b)


# ------------------------- pure-JAX reference (f32) --------------------------

def _reference(x, weight, bias):
    n, c, h, w = x.shape
    cout = weight.shape[1]
    y = jnp.einsum('nchw,coyx->nohywx', x, weight)      # (N, Cout, H, 2, W, 2)
    y = y.reshape(n, cout, 2 * h, 2 * w)
    return y + bias[None, :, None, None]


# ----------------------------------- main ------------------------------------

if __name__ == "__main__":
    N, C, H, W = 2, 4, 16, 16
    key = jax.random.PRNGKey(0)
    kx, kp = jax.random.split(key)
    x = jax.random.normal(kx, (N, C, H, W), dtype=jnp.float32)
    params = init_up_params(kp, C)

    out = jax.block_until_ready(up_forward(x, params))

    Cout = C // 2
    assert out.shape == (N, Cout, 2 * H, 2 * W), out.shape
    assert out.dtype == jnp.bfloat16, out.dtype

    out_f32 = out.astype(jnp.float32)
    assert bool(jnp.all(jnp.isfinite(out_f32)))

    ref = _reference(x, *params)
    err = float(jnp.max(jnp.abs(out_f32 - ref)))
    assert err < 2e-2, f"max abs error {err}"

    print("KERNEL_OK")
</pallas_src>

<mosaic_0001>
module attributes {stable_mosaic.version = 11 : i64} {
  func.func @_up_kernel(%arg0: i32, %arg1: i32, %arg2: memref<8x4xbf16, #tpu.memory_space<vmem>>, %arg3: memref<8x1xf32, #tpu.memory_space<vmem>>, %arg4: memref<1x4x256xf32, #tpu.memory_space<vmem>>, %arg5: memref<1x2x32x16xi32, #tpu.memory_space<vmem>>) attributes {dimension_semantics = [#tpu.dimension_semantics<parallel>, #tpu.dimension_semantics<parallel>], iteration_bounds = array<i64: 2, 1>, scalar_prefetch = 0 : i64, scratch_operands = 0 : i64, tpu.core_type = #tpu.core_type<tc>, window_params = [{pipeline_mode = #tpu.pipeline_mode<synchronous>, transform_indices = @transform_0, window_bounds = array<i64: 8, 4>}, {pipeline_mode = #tpu.pipeline_mode<synchronous>, transform_indices = @transform_1, window_bounds = array<i64: 8, 1>}, {transform_indices = @transform_2, window_bounds = array<i64: 1, 4, 256>}, {transform_indices = @transform_3, window_bounds = array<i64: 1, 2, 32, 16>}]} {
    %c0 = arith.constant 0 : index
    %c0_0 = arith.constant 0 : index
    %c0_1 = arith.constant 0 : index
    %0 = vector.load %arg4[%c0, %c0_0, %c0_1] : memref<1x4x256xf32, #tpu.memory_space<vmem>>, vector<1x4x256xf32>
    %1 = vector.shape_cast %0 : vector<1x4x256xf32> to vector<4x256xf32>
    %2 = arith.truncf %1 : vector<4x256xf32> to vector<4x256xbf16>
    %c0_2 = arith.constant 0 : index
    %c0_3 = arith.constant 0 : index
    %3 = vector.load %arg2[%c0_2, %c0_3] : memref<8x4xbf16, #tpu.memory_space<vmem>>, vector<8x4xbf16>
    %cst = arith.constant dense<0.000000e+00> : vector<8x256xf32>
    %4 = tpu.matmul %3, %2, %cst {dimension_numbers = #tpu.dot_dimension_numbers<[1], [0], [0], [1], [0, 0, 1, 1], [], []>} : vector<8x4xbf16>, vector<4x256xbf16>, vector<8x256xf32> -> vector<8x256xf32>
    %c0_4 = arith.constant 0 : index
    %c0_5 = arith.constant 0 : index
    %5 = vector.load %arg3[%c0_4, %c0_5] : memref<8x1xf32, #tpu.memory_space<vmem>>, vector<8x1xf32>
    %6 = vector.broadcast %5 : vector<8x1xf32> to vector<8x256xf32>
    %7 = arith.addf %4, %6 : vector<8x256xf32>
    %8 = tpu.bitcast %7 : vector<8x256xf32> -> vector<8x256xi32>
    %c16_i32 = arith.constant 16 : i32
    %9 = vector.broadcast %c16_i32 : i32 to vector<8x256xi32>
    %10 = arith.shrui %8, %9 : vector<8x256xi32>
    %c1_i32 = arith.constant 1 : i32
    %11 = vector.broadcast %c1_i32 : i32 to vector<8x256xi32>
    %12 = arith.andi %10, %11 : vector<8x256xi32>
    %c32767_i32 = arith.constant 32767 : i32
    %13 = vector.broadcast %c32767_i32 : i32 to vector<8x256xi32>
    %14 = arith.addi %13, %12 : vector<8x256xi32>
    %15 = arith.addi %8, %14 : vector<8x256xi32>
    %c16_i32_6 = arith.constant 16 : i32
    %16 = vector.broadcast %c16_i32_6 : i32 to vector<8x256xi32>
    %17 = arith.shrui %15, %16 : vector<8x256xi32>
    %18 = vector.extract_strided_slice %17 {offsets = [0, 0], sizes = [2, 256], strides = [1, 1]} : vector<8x256xi32> to vector<2x256xi32>
    %19 = vector.extract_strided_slice %17 {offsets = [2, 0], sizes = [2, 256], strides = [1, 1]} : vector<8x256xi32> to vector<2x256xi32>
    %20 = vector.extract_strided_slice %17 {offsets = [4, 0], sizes = [2, 256], strides = [1, 1]} : vector<8x256xi32> to vector<2x256xi32>
    %21 = vector.extract_strided_slice %17 {offsets = [6, 0], sizes = [2, 256], strides = [1, 1]} : vector<8x256xi32> to vector<2x256xi32>
    %c16_i32_7 = arith.constant 16 : i32
    %22 = vector.broadcast %c16_i32_7 : i32 to vector<2x256xi32>
    %23 = arith.shli %19, %22 : vector<2x256xi32>
    %24 = arith.ori %18, %23 : vector<2x256xi32>
    %c16_i32_8 = arith.constant 16 : i32
    %25 = vector.broadcast %c16_i32_8 : i32 to vector<2x256xi32>
    %26 = arith.shli %21, %25 : vector<2x256xi32>
    %27 = arith.ori %20, %26 : vector<2x256xi32>
    %28 = vector.extract_strided_slice %24 {offsets = [0, 0], sizes = [2, 16], strides = [1, 1]} : vector<2x256xi32> to vector<2x16xi32>
    %c0_9 = arith.constant 0 : index
    %c0_10 = arith.constant 0 : index
    %c0_11 = arith.constant 0 : index
    %c0_12 = arith.constant 0 : index
    %29 = vector.load %arg5[%c0_9, %c0_10, %c0_11, %c0_12] : memref<1x2x32x16xi32, #tpu.memory_space<vmem>>, vector<1x2x1x16xi32>
    %30 = vector.shape_cast %29 : vector<1x2x1x16xi32> to vector<2x16xi32>
    %31 = vector.shape_cast %28 : vector<2x16xi32> to vector<1x2x1x16xi32>
    tpu.vector_store %arg5[%c0_9, %c0_10, %c0_11, %c0_12], %31 {strides = array<i32>} : memref<1x2x32x16xi32, #tpu.memory_space<vmem>>, vector<1x2x1x16xi32>,
    %32 = vector.extract_strided_slice %27 {offsets = [0, 0], sizes = [2, 16], strides = [1, 1]} : vector<2x256xi32> to vector<2x16xi32>
    %c0_13 = arith.constant 0 : index
    %c0_14 = arith.constant 0 : index
    %c1 = arith.constant 1 : index
    %c0_15 = arith.constant 0 : index
    %33 = vector.load %arg5[%c0_13, %c0_14, %c1, %c0_15] : memref<1x2x32x16xi32, #tpu.memory_space<vmem>>, vector<1x2x1x16xi32>
    %34 = vector.shape_cast %33 : vector<1x2x1x16xi32> to vector<2x16xi32>
    %35 = vector.shape_cast %32 : vector<2x16xi32> to vector<1x2x1x16xi32>
    tpu.vector_store %arg5[%c0_13, %c0_14, %c1, %c0_15], %35 {strides = array<i32>} : memref<1x2x32x16xi32, #tpu.memory_space<vmem>>, vector<1x2x1x16xi32>,
    %36 = vector.extract_strided_slice %24 {offsets = [0, 16], sizes = [2, 16], strides = [1, 1]} : vector<2x256xi32> to vector<2x16xi32>
    %c0_16 = arith.constant 0 : index
    %c0_17 = arith.constant 0 : index
    %c2 = arith.constant 2 : index
    %c0_18 = arith.constant 0 : index
    %37 = vector.load %arg5[%c0_16, %c0_17, %c2, %c0_18] : memref<1x2x32x16xi32, #tpu.memory_space<vmem>>, vector<1x2x1x16xi32>
    %38 = vector.shape_cast %37 : vector<1x2x1x16xi32> to vector<2x16xi32>
    %39 = vector.shape_cast %36 : vector<2x16xi32> to vector<1x2x1x16xi32>
    tpu.vector_store %arg5[%c0_16, %c0_17, %c2, %c0_18], %39 {strides = array<i32>} : memref<1x2x32x16xi32, #tpu.memory_space<vmem>>, vector<1x2x1x16xi32>,
    %40 = vector.extract_strided_slice %27 {offsets = [0, 16], sizes = [2, 16], strides = [1, 1]} : vector<2x256xi32> to vector<2x16xi32>
    %c0_19 = arith.constant 0 : index
    %c0_20 = arith.constant 0 : index
    %c3 = arith.constant 3 : index
    %c0_21 = arith.constant 0 : index
    %41 = vector.load %arg5[%c0_19, %c0_20, %c3, %c0_21] : memref<1x2x32x16xi32, #tpu.memory_space<vmem>>, vector<1x2x1x16xi32>
    %42 = vector.shape_cast %41 : vector<1x2x1x16xi32> to vector<2x16xi32>
    %43 = vector.shape_cast %40 : vector<2x16xi32> to vector<1x2x1x16xi32>
    tpu.vector_store %arg5[%c0_19, %c0_20, %c3, %c0_21], %43 {strides = array<i32>} : memref<1x2x32x16xi32, #tpu.memory_space<vmem>>, vector<1x2x1x16xi32>,
    %44 = vector.extract_strided_slice %24 {offsets = [0, 32], sizes = [2, 16], strides = [1, 1]} : vector<2x256xi32> to vector<2x16xi32>
    %c0_22 = arith.constant 0 : index
    %c0_23 = arith.constant 0 : index
    %c4 = arith.constant 4 : index
    %c0_24 = arith.constant 0 : index
    %45 = vector.load %arg5[%c0_22, %c0_23, %c4, %c0_24] : memref<1x2x32x16xi32, #tpu.memory_space<vmem>>, vector<1x2x1x16xi32>
    %46 = vector.shape_cast %45 : vector<1x2x1x16xi32> to vector<2x16xi32>
    %47 = vector.shape_cast %44 : vector<2x16xi32> to vector<1x2x1x16xi32>
    tpu.vector_store %arg5[%c0_22, %c0_23, %c4, %c0_24], %47 {strides = array<i32>} : memref<1x2x32x16xi32, #tpu.memory_space<vmem>>, vector<1x2x1x16xi32>,
    %48 = vector.extract_strided_slice %27 {offsets = [0, 32], sizes = [2, 16], strides = [1, 1]} : vector<2x256xi32> to vector<2x16xi32>
    %c0_25 = arith.constant 0 : index
    %c0_26 = arith.constant 0 : index
    %c5 = arith.constant 5 : index
    %c0_27 = arith.constant 0 : index
    %49 = vector.load %arg5[%c0_25, %c0_26, %c5, %c0_27] : memref<1x2x32x16xi32, #tpu.memory_space<vmem>>, vector<1x2x1x16xi32>
    %50 = vector.shape_cast %49 : vector<1x2x1x16xi32> to vector<2x16xi32>
    %51 = vector.shape_cast %48 : vector<2x16xi32> to vector<1x2x1x16xi32>
    tpu.vector_store %arg5[%c0_25, %c0_26, %c5, %c0_27], %51 {strides = array<i32>} : memref<1x2x32x16xi32, #tpu.memory_space<vmem>>, vector<1x2x1x16xi32>,
    %52 = vector.extract_strided_slice %24 {offsets = [0, 48], sizes = [2, 16], strides = [1, 1]} : vector<2x256xi32> to vector<2x16xi32>
    %c0_28 = arith.constant 0 : index
    %c0_29 = arith.constant 0 : index
    %c6 = arith.constant 6 : index
    %c0_30 = arith.constant 0 : index
    %53 = vector.load %arg5[%c0_28, %c0_29, %c6, %c0_30] : memref<1x2x32x16xi32, #tpu.memory_space<vmem>>, vector<1x2x1x16xi32>
    %54 = vector.shape_cast %53 : vector<1x2x1x16xi32> to vector<2x16xi32>
    %55 = vector.shape_cast %52 : vector<2x16xi32> to vector<1x2x1x16xi32>
    tpu.vector_store %arg5[%c0_28, %c0_29, %c6, %c0_30], %55 {strides = array<i32>} : memref<1x2x32x16xi32, #tpu.memory_space<vmem>>, vector<1x2x1x16xi32>,
    %56 = vector.extract_strided_slice %27 {offsets = [0, 48], sizes = [2, 16], strides = [1, 1]} : vector<2x256xi32> to vector<2x16xi32>
    %c0_31 = arith.constant 0 : index
    %c0_32 = arith.constant 0 : index
    %c7 = arith.constant 7 : index
    %c0_33 = arith.constant 0 : index
    %57 = vector.load %arg5[%c0_31, %c0_32, %c7, %c0_33] : memref<1x2x32x16xi32, #tpu.memory_space<vmem>>, vector<1x2x1x16xi32>
    %58 = vector.shape_cast %57 : vector<1x2x1x16xi32> to vector<2x16xi32>
    %59 = vector.shape_cast %56 : vector<2x16xi32> to vector<1x2x1x16xi32>
    tpu.vector_store %arg5[%c0_31, %c0_32, %c7, %c0_33], %59 {strides = array<i32>} : memref<1x2x32x16xi32, #tpu.memory_space<vmem>>, vector<1x2x1x16xi32>,
    %60 = vector.extract_strided_slice %24 {offsets = [0, 64], sizes = [2, 16], strides = [1, 1]} : vector<2x256xi32> to vector<2x16xi32>
    %c0_34 = arith.constant 0 : index
    %c0_35 = arith.constant 0 : index
    %c8 = arith.constant 8 : index
    %c0_36 = arith.constant 0 : index
    %61 = vector.load %arg5[%c0_34, %c0_35, %c8, %c0_36] : memref<1x2x32x16xi32, #tpu.memory_space<vmem>>, vector<1x2x1x16xi32>
    %62 = vector.shape_cast %61 : vector<1x2x1x16xi32> to vector<2x16xi32>
    %63 = vector.shape_cast %60 : vector<2x16xi32> to vector<1x2x1x16xi32>
    tpu.vector_store %arg5[%c0_34, %c0_35, %c8, %c0_36], %63 {strides = array<i32>} : memref<1x2x32x16xi32, #tpu.memory_space<vmem>>, vector<1x2x1x16xi32>,
    %64 = vector.extract_strided_slice %27 {offsets = [0, 64], sizes = [2, 16], strides = [1, 1]} : vector<2x256xi32> to vector<2x16xi32>
    %c0_37 = arith.constant 0 : index
    %c0_38 = arith.constant 0 : index
    %c9 = arith.constant 9 : index
    %c0_39 = arith.constant 0 : index
    %65 = vector.load %arg5[%c0_37, %c0_38, %c9, %c0_39] : memref<1x2x32x16xi32, #tpu.memory_space<vmem>>, vector<1x2x1x16xi32>
    %66 = vector.shape_cast %65 : vector<1x2x1x16xi32> to vector<2x16xi32>
    %67 = vector.shape_cast %64 : vector<2x16xi32> to vector<1x2x1x16xi32>
    tpu.vector_store %arg5[%c0_37, %c0_38, %c9, %c0_39], %67 {strides = array<i32>} : memref<1x2x32x16xi32, #tpu.memory_space<vmem>>, vector<1x2x1x16xi32>,
    %68 = vector.extract_strided_slice %24 {offsets = [0, 80], sizes = [2, 16], strides = [1, 1]} : vector<2x256xi32> to vector<2x16xi32>
    %c0_40 = arith.constant 0 : index
    %c0_41 = arith.constant 0 : index
    %c10 = arith.constant 10 : index
    %c0_42 = arith.constant 0 : index
    %69 = vector.load %arg5[%c0_40, %c0_41, %c10, %c0_42] : memref<1x2x32x16xi32, #tpu.memory_space<vmem>>, vector<1x2x1x16xi32>
    %70 = vector.shape_cast %69 : vector<1x2x1x16xi32> to vector<2x16xi32>
    %71 = vector.shape_cast %68 : vector<2x16xi32> to vector<1x2x1x16xi32>
    tpu.vector_store %arg5[%c0_40, %c0_41, %c10, %c0_42], %71 {strides = array<i32>} : memref<1x2x32x16xi32, #tpu.memory_space<vmem>>, vector<1x2x1x16xi32>,
    %72 = vector.extract_strided_slice %27 {offsets = [0, 80], sizes = [2, 16], strides = [1, 1]} : vector<2x256xi32> to vector<2x16xi32>
    %c0_43 = arith.constant 0 : index
    %c0_44 = arith.constant 0 : index
    %c11 = arith.constant 11 : index
    %c0_45 = arith.constant 0 : index
    %73 = vector.load %arg5[%c0_43, %c0_44, %c11, %c0_45] : memref<1x2x32x16xi32, #tpu.memory_space<vmem>>, vector<1x2x1x16xi32>
    %74 = vector.shape_cast %73 : vector<1x2x1x16xi32> to vector<2x16xi32>
    %75 = vector.shape_cast %72 : vector<2x16xi32> to vector<1x2x1x16xi32>
    tpu.vector_store %arg5[%c0_43, %c0_44, %c11, %c0_45], %75 {strides = array<i32>} : memref<1x2x32x16xi32, #tpu.memory_space<vmem>>, vector<1x2x1x16xi32>,
    %76 = vector.extract_strided_slice %24 {offsets = [0, 96], sizes = [2, 16], strides = [1, 1]} : vector<2x256xi32> to vector<2x16xi32>
    %c0_46 = arith.constant 0 : index
    %c0_47 = arith.constant 0 : index
    %c12 = arith.constant 12 : index
    %c0_48 = arith.constant 0 : index
    %77 = vector.load %arg5[%c0_46, %c0_47, %c12, %c0_48] : memref<1x2x32x16xi32, #tpu.memory_space<vmem>>, vector<1x2x1x16xi32>
    %78 = vector.shape_cast %77 : vector<1x2x1x16xi32> to vector<2x16xi32>
    %79 = vector.shape_cast %76 : vector<2x16xi32> to vector<1x2x1x16xi32>
    tpu.vector_store %arg5[%c0_46, %c0_47, %c12, %c0_48], %79 {strides = array<i32>} : memref<1x2x32x16xi32, #tpu.memory_space<vmem>>, vector<1x2x1x16xi32>,
    %80 = vector.extract_strided_slice %27 {offsets = [0, 96], sizes = [2, 16], strides = [1, 1]} : vector<2x256xi32> to vector<2x16xi32>
    %c0_49 = arith.constant 0 : index
    %c0_50 = arith.constant 0 : index
    %c13 = arith.constant 13 : index
    %c0_51 = arith.constant 0 : index
    %81 = vector.load %arg5[%c0_49, %c0_50, %c13, %c0_51] : memref<1x2x32x16xi32, #tpu.memory_space<vmem>>, vector<1x2x1x16xi32>
    %82 = vector.shape_cast %81 : vector<1x2x1x16xi32> to vector<2x16xi32>
    %83 = vector.shape_cast %80 : vector<2x16xi32> to vector<1x2x1x16xi32>
    tpu.vector_store %arg5[%c0_49, %c0_50, %c13, %c0_51], %83 {strides = array<i32>} : memref<1x2x32x16xi32, #tpu.memory_space<vmem>>, vector<1x2x1x16xi32>,
    %84 = vector.extract_strided_slice %24 {offsets = [0, 112], sizes = [2, 16], strides = [1, 1]} : vector<2x256xi32> to vector<2x16xi32>
    %c0_52 = arith.constant 0 : index
    %c0_53 = arith.constant 0 : index
    %c14 = arith.constant 14 : index
    %c0_54 = arith.constant 0 : index
    %85 = vector.load %arg5[%c0_52, %c0_53, %c14, %c0_54] : memref<1x2x32x16xi32, #tpu.memory_space<vmem>>, vector<1x2x1x16xi32>
    %86 = vector.shape_cast %85 : vector<1x2x1x16xi32> to vector<2x16xi32>
    %87 = vector.shape_cast %84 : vector<2x16xi32> to vector<1x2x1x16xi32>
    tpu.vector_store %arg5[%c0_52, %c0_53, %c14, %c0_54], %87 {strides = array<i32>} : memref<1x2x32x16xi32, #tpu.memory_space<vmem>>, vector<1x2x1x16xi32>,
    %88 = vector.extract_strided_slice %27 {offsets = [0, 112], sizes = [2, 16], strides = [1, 1]} : vector<2x256xi32> to vector<2x16xi32>
    %c0_55 = arith.constant 0 : index
    %c0_56 = arith.constant 0 : index
    %c15 = arith.constant 15 : index
    %c0_57 = arith.constant 0 : index
    %89 = vector.load %arg5[%c0_55, %c0_56, %c15, %c0_57] : memref<1x2x32x16xi32, #tpu.memory_space<vmem>>, vector<1x2x1x16xi32>
    %90 = vector.shape_cast %89 : vector<1x2x1x16xi32> to vector<2x16xi32>
    %91 = vector.shape_cast %88 : vector<2x16xi32> to vector<1x2x1x16xi32>
    tpu.vector_store %arg5[%c0_55, %c0_56, %c15, %c0_57], %91 {strides = array<i32>} : memref<1x2x32x16xi32, #tpu.memory_space<vmem>>, vector<1x2x1x16xi32>,
    %92 = vector.extract_strided_slice %24 {offsets = [0, 128], sizes = [2, 16], strides = [1, 1]} : vector<2x256xi32> to vector<2x16xi32>
    %c0_58 = arith.constant 0 : index
    %c0_59 = arith.constant 0 : index
    %c16 = arith.constant 16 : index
    %c0_60 = arith.constant 0 : index
    %93 = vector.load %arg5[%c0_58, %c0_59, %c16, %c0_60] : memref<1x2x32x16xi32, #tpu.memory_space<vmem>>, vector<1x2x1x16xi32>
    %94 = vector.shape_cast %93 : vector<1x2x1x16xi32> to vector<2x16xi32>
    %95 = vector.shape_cast %92 : vector<2x16xi32> to vector<1x2x1x16xi32>
    tpu.vector_store %arg5[%c0_58, %c0_59, %c16, %c0_60], %95 {strides = array<i32>} : memref<1x2x32x16xi32, #tpu.memory_space<vmem>>, vector<1x2x1x16xi32>,
    %96 = vector.extract_strided_slice %27 {offsets = [0, 128], sizes = [2, 16], strides = [1, 1]} : vector<2x256xi32> to vector<2x16xi32>
    %c0_61 = arith.constant 0 : index
    %c0_62 = arith.constant 0 : index
    %c17 = arith.constant 17 : index
    %c0_63 = arith.constant 0 : index
    %97 = vector.load %arg5[%c0_61, %c0_62, %c17, %c0_63] : memref<1x2x32x16xi32, #tpu.memory_space<vmem>>, vector<1x2x1x16xi32>
    %98 = vector.shape_cast %97 : vector<1x2x1x16xi32> to vector<2x16xi32>
    %99 = vector.shape_cast %96 : vector<2x16xi32> to vector<1x2x1x16xi32>
    tpu.vector_store %arg5[%c0_61, %c0_62, %c17, %c0_63], %99 {strides = array<i32>} : memref<1x2x32x16xi32, #tpu.memory_space<vmem>>, vector<1x2x1x16xi32>,
    %100 = vector.extract_strided_slice %24 {offsets = [0, 144], sizes = [2, 16], strides = [1, 1]} : vector<2x256xi32> to vector<2x16xi32>
    %c0_64 = arith.constant 0 : index
    %c0_65 = arith.constant 0 : index
    %c18 = arith.constant 18 : index
    %c0_66 = arith.constant 0 : index
    %101 = vector.load %arg5[%c0_64, %c0_65, %c18, %c0_66] : memref<1x2x32x16xi32, #tpu.memory_space<vmem>>, vector<1x2x1x16xi32>
    %102 = vector.shape_cast %101 : vector<1x2x1x16xi32> to vector<2x16xi32>
    %103 = vector.shape_cast %100 : vector<2x16xi32> to vector<1x2x1x16xi32>
    tpu.vector_store %arg5[%c0_64, %c0_65, %c18, %c0_66], %103 {strides = array<i32>} : memref<1x2x32x16xi32, #tpu.memory_space<vmem>>, vector<1x2x1x16xi32>,
    %104 = vector.extract_strided_slice %27 {offsets = [0, 144], sizes = [2, 16], strides = [1, 1]} : vector<2x256xi32> to vector<2x16xi32>
    %c0_67 = arith.constant 0 : index
    %c0_68 = arith.constant 0 : index
    %c19 = arith.constant 19 : index
    %c0_69 = arith.constant 0 : index
    %105 = vector.load %arg5[%c0_67, %c0_68, %c19, %c0_69] : memref<1x2x32x16xi32, #tpu.memory_space<vmem>>, vector<1x2x1x16xi32>
    %106 = vector.shape_cast %105 : vector<1x2x1x16xi32> to vector<2x16xi32>
    %107 = vector.shape_cast %104 : vector<2x16xi32> to vector<1x2x1x16xi32>
    tpu.vector_store %arg5[%c0_67, %c0_68, %c19, %c0_69], %107 {strides = array<i32>} : memref<1x2x32x16xi32, #tpu.memory_space<vmem>>, vector<1x2x1x16xi32>,
    %108 = vector.extract_strided_slice %24 {offsets = [0, 160], sizes = [2, 16], strides = [1, 1]} : vector<2x256xi32> to vector<2x16xi32>
    %c0_70 = arith.constant 0 : index
    %c0_71 = arith.constant 0 : index
    %c20 = arith.constant 20 : index
    %c0_72 = arith.constant 0 : index
    %109 = vector.load %arg5[%c0_70, %c0_71, %c20, %c0_72] : memref<1x2x32x16xi32, #tpu.memory_space<vmem>>, vector<1x2x1x16xi32>
    %110 = vector.shape_cast %109 : vector<1x2x1x16xi32> to vector<2x16xi32>
    %111 = vector.shape_cast %108 : vector<2x16xi32> to vector<1x2x1x16xi32>
    tpu.vector_store %arg5[%c0_70, %c0_71, %c20, %c0_72], %111 {strides = array<i32>} : memref<1x2x32x16xi32, #tpu.memory_space<vmem>>, vector<1x2x1x16xi32>,
    %112 = vector.extract_strided_slice %27 {offsets = [0, 160], sizes = [2, 16], strides = [1, 1]} : vector<2x256xi32> to vector<2x16xi32>
    %c0_73 = arith.constant 0 : index
    %c0_74 = arith.constant 0 : index
    %c21 = arith.constant 21 : index
    %c0_75 = arith.constant 0 : index
    %113 = vector.load %arg5[%c0_73, %c0_74, %c21, %c0_75] : memref<1x2x32x16xi32, #tpu.memory_space<vmem>>, vector<1x2x1x16xi32>
    %114 = vector.shape_cast %113 : vector<1x2x1x16xi32> to vector<2x16xi32>
    %115 = vector.shape_cast %112 : vector<2x16xi32> to vector<1x2x1x16xi32>
    tpu.vector_store %arg5[%c0_73, %c0_74, %c21, %c0_75], %115 {strides = array<i32>} : memref<1x2x32x16xi32, #tpu.memory_space<vmem>>, vector<1x2x1x16xi32>,
    %116 = vector.extract_strided_slice %24 {offsets = [0, 176], sizes = [2, 16], strides = [1, 1]} : vector<2x256xi32> to vector<2x16xi32>
    %c0_76 = arith.constant 0 : index
    %c0_77 = arith.constant 0 : index
    %c22 = arith.constant 22 : index
    %c0_78 = arith.constant 0 : index
    %117 = vector.load %arg5[%c0_76, %c0_77, %c22, %c0_78] : memref<1x2x32x16xi32, #tpu.memory_space<vmem>>, vector<1x2x1x16xi32>
    %118 = vector.shape_cast %117 : vector<1x2x1x16xi32> to vector<2x16xi32>
    %119 = vector.shape_cast %116 : vector<2x16xi32> to vector<1x2x1x16xi32>
    tpu.vector_store %arg5[%c0_76, %c0_77, %c22, %c0_78], %119 {strides = array<i32>} : memref<1x2x32x16xi32, #tpu.memory_space<vmem>>, vector<1x2x1x16xi32>,
    %120 = vector.extract_strided_slice %27 {offsets = [0, 176], sizes = [2, 16], strides = [1, 1]} : vector<2x256xi32> to vector<2x16xi32>
    %c0_79 = arith.constant 0 : index
    %c0_80 = arith.constant 0 : index
    %c23 = arith.constant 23 : index
    %c0_81 = arith.constant 0 : index
    %121 = vector.load %arg5[%c0_79, %c0_80, %c23, %c0_81] : memref<1x2x32x16xi32, #tpu.memory_space<vmem>>, vector<1x2x1x16xi32>
    %122 = vector.shape_cast %121 : vector<1x2x1x16xi32> to vector<2x16xi32>
    %123 = vector.shape_cast %120 : vector<2x16xi32> to vector<1x2x1x16xi32>
    tpu.vector_store %arg5[%c0_79, %c0_80, %c23, %c0_81], %123 {strides = array<i32>} : memref<1x2x32x16xi32, #tpu.memory_space<vmem>>, vector<1x2x1x16xi32>,
    %124 = vector.extract_strided_slice %24 {offsets = [0, 192], sizes = [2, 16], strides = [1, 1]} : vector<2x256xi32> to vector<2x16xi32>
    %c0_82 = arith.constant 0 : index
    %c0_83 = arith.constant 0 : index
    %c24 = arith.constant 24 : index
    %c0_84 = arith.constant 0 : index
    %125 = vector.load %arg5[%c0_82, %c0_83, %c24, %c0_84] : memref<1x2x32x16xi32, #tpu.memory_space<vmem>>, vector<1x2x1x16xi32>
    %126 = vector.shape_cast %125 : vector<1x2x1x16xi32> to vector<2x16xi32>
    %127 = vector.shape_cast %124 : vector<2x16xi32> to vector<1x2x1x16xi32>
    tpu.vector_store %arg5[%c0_82, %c0_83, %c24, %c0_84], %127 {strides = array<i32>} : memref<1x2x32x16xi32, #tpu.memory_space<vmem>>, vector<1x2x1x16xi32>,
    %128 = vector.extract_strided_slice %27 {offsets = [0, 192], sizes = [2, 16], strides = [1, 1]} : vector<2x256xi32> to vector<2x16xi32>
    %c0_85 = arith.constant 0 : index
    %c0_86 = arith.constant 0 : index
    %c25 = arith.constant 25 : index
    %c0_87 = arith.constant 0 : index
    %129 = vector.load %arg5[%c0_85, %c0_86, %c25, %c0_87] : memref<1x2x32x16xi32, #tpu.memory_space<vmem>>, vector<1x2x1x16xi32>
    %130 = vector.shape_cast %129 : vector<1x2x1x16xi32> to vector<2x16xi32>
    %131 = vector.shape_cast %128 : vector<2x16xi32> to vector<1x2x1x16xi32>
    tpu.vector_store %arg5[%c0_85, %c0_86, %c25, %c0_87], %131 {strides = array<i32>} : memref<1x2x32x16xi32, #tpu.memory_space<vmem>>, vector<1x2x1x16xi32>,
    %132 = vector.extract_strided_slice %24 {offsets = [0, 208], sizes = [2, 16], strides = [1, 1]} : vector<2x256xi32> to vector<2x16xi32>
    %c0_88 = arith.constant 0 : index
    %c0_89 = arith.constant 0 : index
    %c26 = arith.constant 26 : index
    %c0_90 = arith.constant 0 : index
    %133 = vector.load %arg5[%c0_88, %c0_89, %c26, %c0_90] : memref<1x2x32x16xi32, #tpu.memory_space<vmem>>, vector<1x2x1x16xi32>
    %134 = vector.shape_cast %133 : vector<1x2x1x16xi32> to vector<2x16xi32>
    %135 = vector.shape_cast %132 : vector<2x16xi32> to vector<1x2x1x16xi32>
    tpu.vector_store %arg5[%c0_88, %c0_89, %c26, %c0_90], %135 {strides = array<i32>} : memref<1x2x32x16xi32, #tpu.memory_space<vmem>>, vector<1x2x1x16xi32>,
    %136 = vector.extract_strided_slice %27 {offsets = [0, 208], sizes = [2, 16], strides = [1, 1]} : vector<2x256xi32> to vector<2x16xi32>
    %c0_91 = arith.constant 0 : index
    %c0_92 = arith.constant 0 : index
    %c27 = arith.constant 27 : index
    %c0_93 = arith.constant 0 : index
    %137 = vector.load %arg5[%c0_91, %c0_92, %c27, %c0_93] : memref<1x2x32x16xi32, #tpu.memory_space<vmem>>, vector<1x2x1x16xi32>
    %138 = vector.shape_cast %137 : vector<1x2x1x16xi32> to vector<2x16xi32>
    %139 = vector.shape_cast %136 : vector<2x16xi32> to vector<1x2x1x16xi32>
    tpu.vector_store %arg5[%c0_91, %c0_92, %c27, %c0_93], %139 {strides = array<i32>} : memref<1x2x32x16xi32, #tpu.memory_space<vmem>>, vector<1x2x1x16xi32>,
    %140 = vector.extract_strided_slice %24 {offsets = [0, 224], sizes = [2, 16], strides = [1, 1]} : vector<2x256xi32> to vector<2x16xi32>
    %c0_94 = arith.constant 0 : index
    %c0_95 = arith.constant 0 : index
    %c28 = arith.constant 28 : index
    %c0_96 = arith.constant 0 : index
    %141 = vector.load %arg5[%c0_94, %c0_95, %c28, %c0_96] : memref<1x2x32x16xi32, #tpu.memory_space<vmem>>, vector<1x2x1x16xi32>
    %142 = vector.shape_cast %141 : vector<1x2x1x16xi32> to vector<2x16xi32>
    %143 = vector.shape_cast %140 : vector<2x16xi32> to vector<1x2x1x16xi32>
    tpu.vector_store %arg5[%c0_94, %c0_95, %c28, %c0_96], %143 {strides = array<i32>} : memref<1x2x32x16xi32, #tpu.memory_space<vmem>>, vector<1x2x1x16xi32>,
    %144 = vector.extract_strided_slice %27 {offsets = [0, 224], sizes = [2, 16], strides = [1, 1]} : vector<2x256xi32> to vector<2x16xi32>
    %c0_97 = arith.constant 0 : index
    %c0_98 = arith.constant 0 : index
    %c29 = arith.constant 29 : index
    %c0_99 = arith.constant 0 : index
    %145 = vector.load %arg5[%c0_97, %c0_98, %c29, %c0_99] : memref<1x2x32x16xi32, #tpu.memory_space<vmem>>, vector<1x2x1x16xi32>
    %146 = vector.shape_cast %145 : vector<1x2x1x16xi32> to vector<2x16xi32>
    %147 = vector.shape_cast %144 : vector<2x16xi32> to vector<1x2x1x16xi32>
    tpu.vector_store %arg5[%c0_97, %c0_98, %c29, %c0_99], %147 {strides = array<i32>} : memref<1x2x32x16xi32, #tpu.memory_space<vmem>>, vector<1x2x1x16xi32>,
    %148 = vector.extract_strided_slice %24 {offsets = [0, 240], sizes = [2, 16], strides = [1, 1]} : vector<2x256xi32> to vector<2x16xi32>
    %c0_100 = arith.constant 0 : index
    %c0_101 = arith.constant 0 : index
    %c30 = arith.constant 30 : index
    %c0_102 = arith.constant 0 : index
    %149 = vector.load %arg5[%c0_100, %c0_101, %c30, %c0_102] : memref<1x2x32x16xi32, #tpu.memory_space<vmem>>, vector<1x2x1x16xi32>
    %150 = vector.shape_cast %149 : vector<1x2x1x16xi32> to vector<2x16xi32>
    %151 = vector.shape_cast %148 : vector<2x16xi32> to vector<1x2x1x16xi32>
    tpu.vector_store %arg5[%c0_100, %c0_101, %c30, %c0_102], %151 {strides = array<i32>} : memref<1x2x32x16xi32, #tpu.memory_space<vmem>>, vector<1x2x1x16xi32>,
    %152 = vector.extract_strided_slice %27 {offsets = [0, 240], sizes = [2, 16], strides = [1, 1]} : vector<2x256xi32> to vector<2x16xi32>
    %c0_103 = arith.constant 0 : index
    %c0_104 = arith.constant 0 : index
    %c31 = arith.constant 31 : index
    %c0_105 = arith.constant 0 : index
    %153 = vector.load %arg5[%c0_103, %c0_104, %c31, %c0_105] : memref<1x2x32x16xi32, #tpu.memory_space<vmem>>, vector<1x2x1x16xi32>
    %154 = vector.shape_cast %153 : vector<1x2x1x16xi32> to vector<2x16xi32>
    %155 = vector.shape_cast %152 : vector<2x16xi32> to vector<1x2x1x16xi32>
    tpu.vector_store %arg5[%c0_103, %c0_104, %c31, %c0_105], %155 {strides = array<i32>} : memref<1x2x32x16xi32, #tpu.memory_space<vmem>>, vector<1x2x1x16xi32>,
    return
  }
  func.func @transform_0(%arg0: i32, %arg1: i32) -> (i32, i32) {
    %c0_i32 = arith.constant 0 : i32
    %c0_i32_0 = arith.constant 0 : i32
    %c0_i32_1 = arith.constant 0 : i32
    return %c0_i32, %c0_i32_0 : i32, i32
  }
  func.func @transform_1(%arg0: i32, %arg1: i32) -> (i32, i32) {
    %c0_i32 = arith.constant 0 : i32
    %c0_i32_0 = arith.constant 0 : i32
    %c0_i32_1 = arith.constant 0 : i32
    return %c0_i32, %c0_i32_0 : i32, i32
  }
  func.func @transform_2(%arg0: i32, %arg1: i32) -> (i32, i32, i32) {
    %c0_i32 = arith.constant 0 : i32
    %c0_i32_0 = arith.constant 0 : i32
    return %arg0, %c0_i32, %arg1 : i32, i32, i32
  }
  func.func @transform_3(%arg0: i32, %arg1: i32) -> (i32, i32, i32, i32) {
    %c0_i32 = arith.constant 0 : i32
    %c0_i32_0 = arith.constant 0 : i32
    %c0_i32_1 = arith.constant 0 : i32
    return %arg0, %c0_i32, %arg1, %c0_i32_0 : i32, i32, i32, i32
  }
}

</mosaic_0001>

<bundles_post_ra>
// kernel: tpu_custom_call.1
= control target key start
LH: loop header
LB: loop body
LE: loop exit
PB: predicated region body
PF: predicated region fallthrough
CT: control target
= control target key end

     0   :  { %s783_s12 = smov 0   ;;  %s785_s13 = smov 0   ;;  %s1031_s0 = inlined_call_operand.vmem [shape: bf16[8,4], index: 0, kind: input, shape index: {}]   ;;  %s1032_s1 = inlined_call_operand.vmem [shape: f32[8,1], index: 1, kind: input, shape index: {}]   ;;  %s1033_s2 = inlined_call_operand.vmem [shape: f32[2,4,256], index: 2, kind: input, shape index: {}]   ;;  %s1034_s3 = inlined_call_operand.vmem [shape: u32[2,2,32,16], index: 3, kind: output, shape index: {}]  }
   0x1   :  { %s787_s14 = smov 0  }
   0x2 LB: > { %s25_s15 = sadd.s32 1, %s748_s13  ;;  %p684_p0 = scmp.ge.s32.totalorder %s752_s14, 1  ;;  %s752_s14 = sphi %s787_s14, %s13_s14   ;;  %s748_s13 = sphi %s785_s13, %s1036_s13   ;;  %s744_s12 = sphi %s783_s12, %s1035_s12  }
   0x3   : > { %p27_p1 = scmp.ge.s32.totalorder %s25_s15, 2  ;;  %p158_p2 = scmp.lt.s32.totalorder %s752_s14, 3 }
   0x5   : > { %s1038_s15 = smov (%p27_p1, %s25_s15), 0  ;;  %p159_p3 = pnand %p684_p0, %p158_p2 }
   0x6   : > { %p191_p4 = scmp.lt.s32.totalorder (!%p159_p3), %s744_s12, 1  ;;  %v754_v0 = vmov (!%p159_p3), 0   ;;  %v218_v1 = vld [vmem:[%s1032_s1] sm:$0xff] (!%p159_p3)  ;;  %vm228_vm0 = vcmask (!%p159_p3), 1041408   ;;  %vm224_vm1 = vcmask (!%p159_p3), 31744   ;;  %v297_v22 = vlaneseq (!%p159_p3)  ;;  %s756_s28 = smov (!%p159_p3), 96  }
   0x7   : > { %162 = sbr.rel (%p159_p3) target bundleno = 486 (0x1e6), region = 32  ;;  %267 = vmatprep.mubr.bf16.mxu0 (!%p159_p3), %v754_v0  ;;  %728 = vset.pattern.permute.xlu0 (!%p159_p3), %v754_v0  ;;  %v217_v7 = vld [vmem:[%s1031_s0] sm:$0xf] (!%p159_p3)  ;;  %v755_v20 = vmov (!%p159_p3), 1966171168   ;;  %vm316_vm2 = vcmask (!%p159_p3), 122880  }
   0x8   : > { %221 = vperm.xlu0 (!%p159_p3), %728, %v218_v1   ;;  %v295_v21 = vunpack.c.l.s4 (!%p159_p3), %v755_v20  ;;  %v298_v28 = vshrl.u32 (!%p159_p3), %v297_v22, 7  ;;  %s757_s29 = smov (!%p159_p3), 112   ;;  %s758_s30 = smov (!%p159_p3), 80  }
   0x9   : > { %s759_s4 = smov (!%p159_p3), 64   ;;  %s760_s5 = smov (!%p159_p3), 48  }
   0xa   : > { %v296_v27 = vunpack.c.0.s8 (!%p159_p3), %v295_v21  ;;  %v814_v39 = vsub.s32 (!%p159_p3), 0, %v298_v28  ;;  %s761_s6 = smov (!%p159_p3), 32   ;;  %s762_s7 = smov (!%p159_p3), 16  }
   0xc   : > { %v299_v33 = vsub.s32 (!%p159_p3), %v296_v27, %v298_v28 }
   0xe   : > { %s1040_s12 = smov (!%p191_p4, %s744_s12), 1 }
   0xf   : > { %s693_s18 = sshll.u32 %s1040_s12, 3  ;;  %s694_s24 = sshll.u32 %s1040_s12, 6 }
  0x10   : > { %s198_s21 = scalar_lea.vmem %s1033_s2, %s693_s18  ;;  %s819_s27 = scalar_lea.vmem %s1034_s3, %s694_s24 }
  0x11   : > { %v211_v2 = vld [vmem:[%s198_s21] sm:$0xff] }
  0x12   : > { %v213_v3 = vcombine.high %v211_v2, %v211_v2  ;;  %v215_v4 = vpack.c.bf16 %v211_v2, %v211_v2 }
  0x14   : > { %v216_v5 = vpack.c.bf16 %v213_v3, %v213_v3  ;;  %v230_v6 = vsel %vm228_vm0, %v215_v4, 0 }
  0x16   : > { %689 = vmatprep.subr.msk.bf16.mxu0 %vm228_vm0, %v216_v5 }
  0x17   : > { %236 = vmatpush1.bf16.msra.mxu0 %v230_v6 }
  0x1a   : > { %690 = vmatmul.mubr.msk.bf16.vlgmr.msra.gmra.mrb[0].mxu0 %vm224_vm1, %v217_v7 }
  0x87   : > { %v222_v8 = vpop.permute.xlu0 %221 }
  0xed   : > { %v269_v9 = vpop.f32.mrb[0].mxu0 }
  0xee   : > { %v270_v10 = vadd.f32 %v269_v9, %v222_v8  ;;  %v271_v11 = vpop.f32.mrb[1].mxu0 }
  0xef   : > { %v272_v12 = vadd.f32 %v271_v11, %v222_v8  ;;  %v273_v13 = vpop.f32.mrb[2].mxu0 }
  0xf0   : > { %v278_v14 = vshrl.u32 %v270_v10, 16  ;;  %v274_v15 = vpop.f32.mrb[3].mxu0 }
  0xf1   : > { %v279_v16 = vshrl.u32 %v272_v12, 16 }
  0xf2   : > { %v280_v17 = vand.u32 1, %v278_v14 }
  0xf3   : > { %v281_v18 = vand.u32 1, %v279_v16 }
  0xf4   : > { %v282_v19 = vadd.s32 32767, %v280_v17 }
  0xf5   : > { %v283_v23 = vadd.s32 32767, %v281_v18 }
  0xf6   : > { %v284_v24 = vadd.s32 %v282_v19, %v270_v10 }
  0xf7   : > { %v285_v25 = vadd.s32 %v283_v23, %v272_v12 }
  0xf8   : > { %v286_v26 = vshrl.u32 %v284_v24, 16 }
  0xf9   : > { %v287_v29 = vshrl.u32 %v285_v25, 16 }
  0xfa   : > { %v288_v30 = vshll.u32 %v286_v26, 16 }
  0xfb   : > { %v289_v31 = vshll.u32 %v287_v29, 16 }
  0xfc   : > { %v290_v32 = vrot.slane %v288_v30, 2 }
  0xfd   : > { %v291_v34 = vrot.slane %v289_v31, 2 }
  0xfe   : > { %v292_v35 = vor.u32 %v290_v32, %v286_v26 }
  0xff   : > { %v293_v36 = vor.u32 %v291_v34, %v287_v29 }
 0x100   : > { %v300_v37 = vrot.slane %v292_v35, %v299_v33  ;;  %v319_v38 = vcombine.high %v292_v35, %v292_v35 }
 0x101   : > { %v450_v40 = vrot.slane %v293_v36, %v299_v33  ;;  %v468_v41 = vcombine.high %v293_v36, %v293_v36 }
 0x102   : > { %v301_v42 = vcombine.high %v300_v37, %v300_v37  ;;  %v308_v43 = vrot.slane %v300_v37, %v299_v33  ;;  %v326_v44 = vrot.slane %v319_v38, %v299_v33 }
 0x103   : > { %v451_v45 = vcombine.high %v450_v40, %v450_v40  ;;  %v458_v46 = vrot.slane %v450_v40, %v299_v33  ;;  %v475_v47 = vrot.slane %v468_v41, %v299_v33 }
 0x104   : > { %v315_v48 = vrot.slane %v301_v42, %v299_v33  ;;  %317 = vst.msk [vmem:[%s819_s27] sm:$0x1] %vm316_vm2, %v308_v43  ;;  %v327_v49 = vcombine.high %v326_v44, %v326_v44  ;;  %v334_v50 = vrot.slane %v326_v44, %v299_v33  ;;  %v347_v51 = vrot.slane %v308_v43, %v814_v39 }
 0x105   : > { %v465_v52 = vrot.slane %v451_v45, %v299_v33  ;;  %466 = vst.msk [vmem:[%s819_s27 + $0x10] sm:$0x1] %vm316_vm2, %v458_v46  ;;  %v476_v53 = vcombine.high %v475_v47, %v475_v47  ;;  %v483_v54 = vrot.slane %v475_v47, %v299_v33  ;;  %v496_v60 = vrot.slane %v458_v46, %v814_v39 }
 0x106   : > { %318 = vst.msk [vmem:[%s819_s27 + $0x20] sm:$0x1] %vm316_vm2, %v315_v48  ;;  %v341_v55 = vrot.slane %v327_v49, %v299_v33  ;;  %342 = vst.msk [vmem:[%s819_s27 + $0x1] sm:$0x1] %vm316_vm2, %v334_v50  ;;  %372 = vrot.lane.b32.xlu1 %v347_v51, %s756_s28  ;;  %352 = vrot.lane.b32.xlu0 %v347_v51, %s757_s29  ;;  %v351_v58 = vrot.slane %v315_v48, %v814_v39 }
 0x107   : > { %467 = vst.msk [vmem:[%s819_s27 + $0x30] sm:$0x1] %vm316_vm2, %v465_v52  ;;  %v490_v56 = vrot.slane %v476_v53, %v299_v33  ;;  %491 = vst.msk [vmem:[%s819_s27 + $0x11] sm:$0x1] %vm316_vm2, %v483_v54  ;;  %v837_v57 = vrot.slane %v483_v54, %v814_v39  ;;  %v500_v61 = vrot.slane %v465_v52, %v814_v39 }
 0x108   : > { %343 = vst.msk [vmem:[%s819_s27 + $0x21] sm:$0x1] %vm316_vm2, %v341_v55  ;;  %v361_v62 = vrot.slane %v334_v50, %v814_v39  ;;  %v365_v63 = vrot.slane %v341_v55, %v814_v39 }
 0x109   : > { %492 = vst.msk [vmem:[%s819_s27 + $0x31] sm:$0x1] %vm316_vm2, %v490_v56  ;;  %v514_v59 = vrot.slane %v490_v56, %v814_v39 }
 0x10a   : > { %384 = vrot.lane.b32.xlu1 %v347_v51, %s758_s30  ;;  %374 = vrot.lane.b32.xlu0 %v351_v58, %s756_s28 }
 0x10e   : > { %396 = vrot.lane.b32.xlu1 %v347_v51, %s759_s4  ;;  %386 = vrot.lane.b32.xlu0 %v351_v58, %s758_s30 }
 0x112   : > { %408 = vrot.lane.b32.xlu1 %v347_v51, %s760_s5  ;;  %398 = vrot.lane.b32.xlu0 %v351_v58, %s759_s4 }
 0x116   : > { %420 = vrot.lane.b32.xlu1 %v347_v51, %s761_s6  ;;  %410 = vrot.lane.b32.xlu0 %v351_v58, %s760_s5 }
 0x11a   : > { %432 = vrot.lane.b32.xlu1 %v347_v51, %s762_s7  ;;  %422 = vrot.lane.b32.xlu0 %v351_v58, %s761_s6 }
 0x11e   : > { %501 = vrot.lane.b32.xlu1 %v496_v60, %s757_s29  ;;  %434 = vrot.lane.b32.xlu0 %v351_v58, %s762_s7 }
 0x122   : > { %521 = vrot.lane.b32.xlu1 %v496_v60, %s756_s28  ;;  %503 = vrot.lane.b32.xlu0 %v500_v61, %s757_s29 }
 0x126   : > { %533 = vrot.lane.b32.xlu1 %v496_v60, %s758_s30  ;;  %523 = vrot.lane.b32.xlu0 %v500_v61, %s756_s28 }
 0x12a   : > { %545 = vrot.lane.b32.xlu1 %v496_v60, %s759_s4  ;;  %535 = vrot.lane.b32.xlu0 %v500_v61, %s758_s30 }
 0x12e   : > { %557 = vrot.lane.b32.xlu1 %v496_v60, %s760_s5  ;;  %547 = vrot.lane.b32.xlu0 %v500_v61, %s759_s4 }
 0x132   : > { %569 = vrot.lane.b32.xlu1 %v496_v60, %s761_s6  ;;  %559 = vrot.lane.b32.xlu0 %v500_v61, %s760_s5 }
 0x136   : > { %581 = vrot.lane.b32.xlu1 %v496_v60, %s762_s7  ;;  %571 = vrot.lane.b32.xlu0 %v500_v61, %s761_s6 }
 0x13a   : > { %583 = vrot.lane.b32.xlu0 %v500_v61, %s762_s7  ;;  %354 = vrot.lane.b32.xlu1 %v351_v58, %s757_s29 }
 0x13e   : > { %368 = vrot.lane.b32.xlu0 %v365_v63, %s757_s29  ;;  %366 = vrot.lane.b32.xlu1 %v361_v62, %s757_s29 }
 0x142   : > { %380 = vrot.lane.b32.xlu0 %v365_v63, %s756_s28  ;;  %378 = vrot.lane.b32.xlu1 %v361_v62, %s756_s28 }
 0x146   : > { %392 = vrot.lane.b32.xlu0 %v365_v63, %s758_s30  ;;  %390 = vrot.lane.b32.xlu1 %v361_v62, %s758_s30 }
 0x14a   : > { %404 = vrot.lane.b32.xlu0 %v365_v63, %s759_s4  ;;  %402 = vrot.lane.b32.xlu1 %v361_v62, %s759_s4 }
 0x14e   : > { %416 = vrot.lane.b32.xlu0 %v365_v63, %s760_s5  ;;  %414 = vrot.lane.b32.xlu1 %v361_v62, %s760_s5 }
 0x152   : > { %428 = vrot.lane.b32.xlu0 %v365_v63, %s761_s6  ;;  %426 = vrot.lane.b32.xlu1 %v361_v62, %s761_s6 }
 0x156   : > { %440 = vrot.lane.b32.xlu0 %v365_v63, %s762_s7  ;;  %438 = vrot.lane.b32.xlu1 %v361_v62, %s762_s7 }
 0x15a   : > { %517 = vrot.lane.b32.xlu0 %v514_v59, %s757_s29  ;;  %515 = vrot.lane.b32.xlu1 %v837_v57, %s757_s29 }
 0x15e   : > { %529 = vrot.lane.b32.xlu0 %v514_v59, %s756_s28  ;;  %527 = vrot.lane.b32.xlu1 %v837_v57, %s756_s28 }
 0x162   : > { %541 = vrot.lane.b32.xlu0 %v514_v59, %s758_s30  ;;  %539 = vrot.lane.b32.xlu1 %v837_v57, %s758_s30 }
 0x166   : > { %553 = vrot.lane.b32.xlu0 %v514_v59, %s759_s4  ;;  %551 = vrot.lane.b32.xlu1 %v837_v57, %s759_s4 }
 0x16a   : > { %565 = vrot.lane.b32.xlu0 %v514_v59, %s760_s5  ;;  %563 = vrot.lane.b32.xlu1 %v837_v57, %s760_s5 }
 0x16e   : > { %577 = vrot.lane.b32.xlu0 %v514_v59, %s761_s6  ;;  %575 = vrot.lane.b32.xlu1 %v837_v57, %s761_s6 }
 0x172   : > { %589 = vrot.lane.b32.xlu0 %v514_v59, %s762_s7  ;;  %587 = vrot.lane.b32.xlu1 %v837_v57, %s762_s7 }
 0x178   : > { %v373_v0 = vpop.permute.xlu1 %372  ;;  %v353_v1 = vpop.permute.xlu0 %352 }
 0x179   : > { %376 = vst.msk [vmem:[%s819_s27 + $0x4] sm:$0x1] %vm316_vm2, %v373_v0  ;;  %356 = vst.msk [vmem:[%s819_s27 + $0x2] sm:$0x1] %vm316_vm2, %v353_v1 }
 0x17c   : > { %v385_v2 = vpop.permute.xlu1 %384  ;;  %v375_v3 = vpop.permute.xlu0 %374 }
 0x17d   : > { %388 = vst.msk [vmem:[%s819_s27 + $0x6] sm:$0x1] %vm316_vm2, %v385_v2  ;;  %377 = vst.msk [vmem:[%s819_s27 + $0x24] sm:$0x1] %vm316_vm2, %v375_v3 }
 0x180   : > { %v397_v4 = vpop.permute.xlu1 %396  ;;  %v387_v5 = vpop.permute.xlu0 %386 }
 0x181   : > { %400 = vst.msk [vmem:[%s819_s27 + $0x8] sm:$0x1] %vm316_vm2, %v397_v4  ;;  %389 = vst.msk [vmem:[%s819_s27 + $0x26] sm:$0x1] %vm316_vm2, %v387_v5 }
 0x184   : > { %v409_v6 = vpop.permute.xlu1 %408  ;;  %v399_v7 = vpop.permute.xlu0 %398 }
 0x185   : > { %412 = vst.msk [vmem:[%s819_s27 + $0xa] sm:$0x1] %vm316_vm2, %v409_v6  ;;  %401 = vst.msk [vmem:[%s819_s27 + $0x28] sm:$0x1] %vm316_vm2, %v399_v7 }
 0x188   : > { %v421_v8 = vpop.permute.xlu1 %420  ;;  %v411_v9 = vpop.permute.xlu0 %410 }
 0x189   : > { %424 = vst.msk [vmem:[%s819_s27 + $0xc] sm:$0x1] %vm316_vm2, %v421_v8  ;;  %413 = vst.msk [vmem:[%s819_s27 + $0x2a] sm:$0x1] %vm316_vm2, %v411_v9 }
 0x18c   : > { %v433_v10 = vpop.permute.xlu1 %432  ;;  %v423_v11 = vpop.permute.xlu0 %422 }
 0x18d   : > { %436 = vst.msk [vmem:[%s819_s27 + $0xe] sm:$0x1] %vm316_vm2, %v433_v10  ;;  %425 = vst.msk [vmem:[%s819_s27 + $0x2c] sm:$0x1] %vm316_vm2, %v423_v11 }
 0x190   : > { %v502_v12 = vpop.permute.xlu1 %501  ;;  %v435_v13 = vpop.permute.xlu0 %434 }
 0x191   : > { %505 = vst.msk [vmem:[%s819_s27 + $0x12] sm:$0x1] %vm316_vm2, %v502_v12  ;;  %437 = vst.msk [vmem:[%s819_s27 + $0x2e] sm:$0x1] %vm316_vm2, %v435_v13 }
 0x194   : > { %v522_v14 = vpop.permute.xlu1 %521  ;;  %v504_v15 = vpop.permute.xlu0 %503 }
 0x195   : > { %525 = vst.msk [vmem:[%s819_s27 + $0x14] sm:$0x1] %vm316_vm2, %v522_v14  ;;  %506 = vst.msk [vmem:[%s819_s27 + $0x32] sm:$0x1] %vm316_vm2, %v504_v15 }
 0x198   : > { %v534_v16 = vpop.permute.xlu1 %533  ;;  %v524_v17 = vpop.permute.xlu0 %523 }
 0x199   : > { %537 = vst.msk [vmem:[%s819_s27 + $0x16] sm:$0x1] %vm316_vm2, %v534_v16  ;;  %526 = vst.msk [vmem:[%s819_s27 + $0x34] sm:$0x1] %vm316_vm2, %v524_v17 }
 0x19c   : > { %v546_v18 = vpop.permute.xlu1 %545  ;;  %v536_v19 = vpop.permute.xlu0 %535 }
 0x19d   : > { %549 = vst.msk [vmem:[%s819_s27 + $0x18] sm:$0x1] %vm316_vm2, %v546_v18  ;;  %538 = vst.msk [vmem:[%s819_s27 + $0x36] sm:$0x1] %vm316_vm2, %v536_v19 }
 0x1a0   : > { %v558_v20 = vpop.permute.xlu1 %557  ;;  %v548_v21 = vpop.permute.xlu0 %547 }
 0x1a1   : > { %561 = vst.msk [vmem:[%s819_s27 + $0x1a] sm:$0x1] %vm316_vm2, %v558_v20  ;;  %550 = vst.msk [vmem:[%s819_s27 + $0x38] sm:$0x1] %vm316_vm2, %v548_v21 }
 0x1a4   : > { %v570_v22 = vpop.permute.xlu1 %569  ;;  %v560_v23 = vpop.permute.xlu0 %559 }
 0x1a5   : > { %573 = vst.msk [vmem:[%s819_s27 + $0x1c] sm:$0x1] %vm316_vm2, %v570_v22  ;;  %562 = vst.msk [vmem:[%s819_s27 + $0x3a] sm:$0x1] %vm316_vm2, %v560_v23 }
 0x1a8   : > { %v582_v24 = vpop.permute.xlu1 %581  ;;  %v572_v25 = vpop.permute.xlu0 %571 }
 0x1a9   : > { %585 = vst.msk [vmem:[%s819_s27 + $0x1e] sm:$0x1] %vm316_vm2, %v582_v24  ;;  %574 = vst.msk [vmem:[%s819_s27 + $0x3c] sm:$0x1] %vm316_vm2, %v572_v25 }
 0x1ac   : > { %v584_v26 = vpop.permute.xlu0 %583  ;;  %v355_v27 = vpop.permute.xlu1 %354 }
 0x1ad   : > { %586 = vst.msk [vmem:[%s819_s27 + $0x3e] sm:$0x1] %vm316_vm2, %v584_v26  ;;  %357 = vst.msk [vmem:[%s819_s27 + $0x22] sm:$0x1] %vm316_vm2, %v355_v27 }
 0x1b0   : > { %v369_v28 = vpop.permute.xlu0 %368  ;;  %v367_v29 = vpop.permute.xlu1 %366 }
 0x1b1   : > { %371 = vst.msk [vmem:[%s819_s27 + $0x23] sm:$0x1] %vm316_vm2, %v369_v28  ;;  %370 = vst.msk [vmem:[%s819_s27 + $0x3] sm:$0x1] %vm316_vm2, %v367_v29 }
 0x1b4   : > { %v381_v30 = vpop.permute.xlu0 %380  ;;  %v379_v31 = vpop.permute.xlu1 %378 }
 0x1b5   : > { %383 = vst.msk [vmem:[%s819_s27 + $0x25] sm:$0x1] %vm316_vm2, %v381_v30  ;;  %382 = vst.msk [vmem:[%s819_s27 + $0x5] sm:$0x1] %vm316_vm2, %v379_v31 }
 0x1b8   : > { %v393_v32 = vpop.permute.xlu0 %392  ;;  %v391_v33 = vpop.permute.xlu1 %390 }
 0x1b9   : > { %395 = vst.msk [vmem:[%s819_s27 + $0x27] sm:$0x1] %vm316_vm2, %v393_v32  ;;  %394 = vst.msk [vmem:[%s819_s27 + $0x7] sm:$0x1] %vm316_vm2, %v391_v33 }
 0x1bc   : > { %v405_v34 = vpop.permute.xlu0 %404  ;;  %v403_v35 = vpop.permute.xlu1 %402 }
 0x1bd   : > { %407 = vst.msk [vmem:[%s819_s27 + $0x29] sm:$0x1] %vm316_vm2, %v405_v34  ;;  %406 = vst.msk [vmem:[%s819_s27 + $0x9] sm:$0x1] %vm316_vm2, %v403_v35 }
 0x1c0   : > { %v417_v36 = vpop.permute.xlu0 %416  ;;  %v415_v37 = vpop.permute.xlu1 %414 }
 0x1c1   : > { %419 = vst.msk [vmem:[%s819_s27 + $0x2b] sm:$0x1] %vm316_vm2, %v417_v36  ;;  %418 = vst.msk [vmem:[%s819_s27 + $0xb] sm:$0x1] %vm316_vm2, %v415_v37 }
 0x1c4   : > { %v429_v38 = vpop.permute.xlu0 %428  ;;  %v427_v39 = vpop.permute.xlu1 %426 }
 0x1c5   : > { %431 = vst.msk [vmem:[%s819_s27 + $0x2d] sm:$0x1] %vm316_vm2, %v429_v38  ;;  %430 = vst.msk [vmem:[%s819_s27 + $0xd] sm:$0x1] %vm316_vm2, %v427_v39 }
 0x1c8   : > { %v441_v40 = vpop.permute.xlu0 %440  ;;  %v439_v41 = vpop.permute.xlu1 %438 }
 0x1c9   : > { %443 = vst.msk [vmem:[%s819_s27 + $0x2f] sm:$0x1] %vm316_vm2, %v441_v40  ;;  %442 = vst.msk [vmem:[%s819_s27 + $0xf] sm:$0x1] %vm316_vm2, %v439_v41 }
 0x1cc   : > { %v518_v42 = vpop.permute.xlu0 %517  ;;  %v516_v43 = vpop.permute.xlu1 %515 }
 0x1cd   : > { %520 = vst.msk [vmem:[%s819_s27 + $0x33] sm:$0x1] %vm316_vm2, %v518_v42  ;;  %519 = vst.msk [vmem:[%s819_s27 + $0x13] sm:$0x1] %vm316_vm2, %v516_v43 }
 0x1d0   : > { %v530_v44 = vpop.permute.xlu0 %529  ;;  %v528_v45 = vpop.permute.xlu1 %527 }
 0x1d1   : > { %532 = vst.msk [vmem:[%s819_s27 + $0x35] sm:$0x1] %vm316_vm2, %v530_v44  ;;  %531 = vst.msk [vmem:[%s819_s27 + $0x15] sm:$0x1] %vm316_vm2, %v528_v45 }
 0x1d4   : > { %v542_v46 = vpop.permute.xlu0 %541  ;;  %v540_v47 = vpop.permute.xlu1 %539 }
 0x1d5   : > { %544 = vst.msk [vmem:[%s819_s27 + $0x37] sm:$0x1] %vm316_vm2, %v542_v46  ;;  %543 = vst.msk [vmem:[%s819_s27 + $0x17] sm:$0x1] %vm316_vm2, %v540_v47 }
 0x1d8   : > { %v554_v48 = vpop.permute.xlu0 %553  ;;  %v552_v49 = vpop.permute.xlu1 %551 }
 0x1d9   : > { %556 = vst.msk [vmem:[%s819_s27 + $0x39] sm:$0x1] %vm316_vm2, %v554_v48  ;;  %555 = vst.msk [vmem:[%s819_s27 + $0x19] sm:$0x1] %vm316_vm2, %v552_v49 }
 0x1dc   : > { %v566_v50 = vpop.permute.xlu0 %565  ;;  %v564_v51 = vpop.permute.xlu1 %563 }
 0x1dd   : > { %568 = vst.msk [vmem:[%s819_s27 + $0x3b] sm:$0x1] %vm316_vm2, %v566_v50  ;;  %567 = vst.msk [vmem:[%s819_s27 + $0x1b] sm:$0x1] %vm316_vm2, %v564_v51 }
 0x1e0   : > { %v578_v52 = vpop.permute.xlu0 %577  ;;  %v576_v53 = vpop.permute.xlu1 %575 }
 0x1e1   : > { %580 = vst.msk [vmem:[%s819_s27 + $0x3d] sm:$0x1] %vm316_vm2, %v578_v52  ;;  %579 = vst.msk [vmem:[%s819_s27 + $0x1d] sm:$0x1] %vm316_vm2, %v576_v53 }
 0x1e4   : > { %v590_v54 = vpop.permute.xlu0 %589  ;;  %v588_v55 = vpop.permute.xlu1 %587 }
 0x1e5   : > { %592 = vst.msk [vmem:[%s819_s27 + $0x3f] sm:$0x1] %vm316_vm2, %v590_v54  ;;  %591 = vst.msk [vmem:[%s819_s27 + $0x1f] sm:$0x1] %vm316_vm2, %v588_v55 }
 0x1e6 PF: > { %s13_s14 = sadd.s32 1, %s752_s14   ;;  %s1035_s12 = smov %s748_s13 }
 0x1e7   : > { %p10_p5 = scmp.ge.s32.totalorder %s13_s14, 4   ;;  %s1036_s13 = smov %s1038_s15 }
 0x1e9   :  { %12 = sbr.rel (!%p10_p5) target bundleno = 2 (0x2), region = 62 }

</bundles_post_ra>
